<compile_context>
chip_gen: v7x
topology: tpu7x:2x2x1
jax: 0.10.0
libtpu: 0.0.40
codegen_flags: <defaults>
</compile_context>

<pallas_src>
import functools
import math

import jax
import jax.numpy as jnp
import numpy as np
from jax.experimental import pallas as pl
from jax.experimental.pallas import tpu as pltpu


# ----------------------------------------------------------------------------
# Fused Embedding kernel: projection + AverageAttn + concat + 2-layer Highway
# ----------------------------------------------------------------------------
def _embedding_kernel(emb_ref, wproj_ref, wred_ref,
                      wh1_ref, bh1_ref, wh2_ref, bh2_ref,
                      out_ref, *, hidden, bt, seq):
    """One batch-block of Bt rows.

    Block shapes (Dp = H+1 padded up to a multiple of 128):
      emb_ref:   (Bt, S, D_albert)          bf16/f32 activation stream
      wproj_ref: (D_albert, Dp)             W_proj^T zero-padded in lanes >= H
      wred_ref:  (Dp, 2)                    col0 = w_att, col1 = ones over real lanes
      wh*_ref:   (2, Dp, Dp)                [0]=W_transform^T, [1]=W_gate^T (zero-padded)
      bh*_ref:   (2, 1, Dp)                 [0]=b_transform,   [1]=b_gate   (zero-padded)
      out_ref:   (Bt, S, Dp)                lane-dense f32 output slab
    """
    H = hidden
    Dp = out_ref.shape[-1]
    d_in = emb_ref.shape[-1]
    rows = bt * seq

    # --- projection (no bias):  x = emb @ W_proj^T  -> (Bt*S, Dp), padded lanes zero  [MXU] ---
    emb = emb_ref[...].reshape(rows, d_in)
    x = jnp.dot(emb, wproj_ref[...], preferred_element_type=jnp.float32)

    # --- AverageAttn: score and sum_h(x) in ONE MXU pass --------------------------------------
    red = jnp.dot(x, wred_ref[...], preferred_element_type=jnp.float32)       # (rows, 2)
    red3 = red.reshape(bt, seq, 2)
    score = red3[:, :, 0:1]                                                    # (Bt, S, 1)
    rowsum = red3[:, :, 1:2]                                                   # (Bt, S, 1)
    score = score - jnp.max(score, axis=1, keepdims=True)                      # softmax over S
    e = jnp.exp(score)
    denom = jnp.sum(e, axis=1, keepdims=True)
    attn = e * pl.reciprocal(denom, approx=True)                               # EUP divide
    avg3 = attn * rowsum                                                       # (Bt, S, 1)

    # --- concat([x, avg], -1) assembled in-register: h = x + avg * one_hot(lane == H) ---------
    lane = jax.lax.broadcasted_iota(jnp.int32, (1, Dp), 1)
    onehot = jnp.where(lane == H, 1.0, 0.0).astype(jnp.float32)                # (1, Dp)
    avg_wide = (avg3 * onehot).reshape(rows, Dp)                               # only lane H nonzero
    h = x + avg_wide                                                           # lanes > H stay zero

    # --- 2-layer Highway (statically unrolled); padded lanes remain zero ----------------------
    for w_ref, b_ref in ((wh1_ref, bh1_ref), (wh2_ref, bh2_ref)):
        t = jax.nn.relu(
            jnp.dot(h, w_ref[0], preferred_element_type=jnp.float32) + b_ref[0])
        g = jax.nn.sigmoid(
            jnp.dot(h, w_ref[1], preferred_element_type=jnp.float32) + b_ref[1])
        h = g * t + (1.0 - g) * h

    # single lane-dense write of the output block
    out_ref[...] = h.reshape(bt, seq, Dp)


def _choose_bt(B, S, D, itemsize, target_bytes=4 << 20):
    """Pick a batch block that keeps the streamed input block ~target_bytes and divides B."""
    bt = int(max(1, min(B, target_bytes // max(1, S * D * itemsize))))
    while B % bt:
        bt -= 1
    # keep >= 2 grid steps when possible so v7x megacore has work for both TensorCores
    if B // bt < 2 and B >= 2:
        bt = max(1, bt // 2)
        while B % bt:
            bt -= 1
    return int(bt)


def embedding_pallas(emb_albert, params):
    """emb_albert: (B, S, D_albert) ALBERT hidden states -> (B, S, hidden+1)."""
    B, S, D_alb = emb_albert.shape
    H = params["w_proj"].shape[0]
    Dc = H + 1
    Dp = ((Dc + 127) // 128) * 128                      # lane-dense padded width (>= 128)
    compute_dtype = emb_albert.dtype                    # bf16 stream if caller provides bf16

    Bt = _choose_bt(B, S, D_alb, jnp.dtype(compute_dtype).itemsize)

    # --- kernel-friendly, zero-padded weight layouts (prepared once in the wrapper) ----------
    wproj_t = jnp.zeros((D_alb, Dp), compute_dtype)
    wproj_t = wproj_t.at[:, :H].set(jnp.transpose(params["w_proj"]).astype(compute_dtype))

    w_red = jnp.zeros((Dp, 2), jnp.float32)
    w_red = w_red.at[:H, 0].set(params["w_att"][:, 0])  # col 0: attention score weights
    w_red = w_red.at[:H, 1].set(1.0)                    # col 1: ones -> sum over hidden dims

    def pad_mat(w):                                     # torch (out, in) -> padded (in, out)
        m = jnp.zeros((Dp, Dp), jnp.float32)
        return m.at[:Dc, :Dc].set(jnp.transpose(w))     # padded INPUT rows stay zero (no leak)

    def pad_vec(b):
        v = jnp.zeros((1, Dp), jnp.float32)
        return v.at[0, :Dc].set(b)

    def pack_layer(wt, bt_, wg, bg):
        w = jnp.stack([pad_mat(wt), pad_mat(wg)], axis=0)      # (2, Dp, Dp)
        b = jnp.stack([pad_vec(bt_), pad_vec(bg)], axis=0)     # (2, 1, Dp)
        return w, b

    wh1, bh1 = pack_layer(params["hwy_wt1"], params["hwy_bt1"],
                          params["hwy_wg1"], params["hwy_bg1"])
    wh2, bh2 = pack_layer(params["hwy_wt2"], params["hwy_bt2"],
                          params["hwy_wg2"], params["hwy_bg2"])

    def const_spec(shape):
        n = len(shape)
        return pl.BlockSpec(shape, lambda *_, _n=n: (0,) * _n)  # resident weights (no re-DMA)

    # --- VMEM budget: double-buffered input + output blocks + resident weights ---------------
    in_block = Bt * S * D_alb * jnp.dtype(compute_dtype).itemsize
    out_block = Bt * S * Dp * 4
    w_bytes = (D_alb * Dp * jnp.dtype(compute_dtype).itemsize + Dp * 2 * 4
               + 2 * (2 * Dp * Dp * 4 + 2 * Dp * 4))
    vmem_limit = int(min(64 << 20,
                         max(32 << 20, 2 * (in_block + out_block) + w_bytes + (4 << 20))))

    out_padded = pl.pallas_call(
        functools.partial(_embedding_kernel, hidden=H, bt=Bt, seq=S),
        out_shape=jax.ShapeDtypeStruct((B, S, Dp), jnp.float32),
        grid_spec=pltpu.PrefetchScalarGridSpec(
            num_scalar_prefetch=0,
            grid=(B // Bt,),
            in_specs=[
                pl.BlockSpec((Bt, S, D_alb), lambda b: (b, 0, 0)),   # streamed activation blocks
                const_spec((D_alb, Dp)),
                const_spec((Dp, 2)),
                const_spec((2, Dp, Dp)),
                const_spec((2, 1, Dp)),
                const_spec((2, Dp, Dp)),
                const_spec((2, 1, Dp)),
            ],
            out_specs=pl.BlockSpec((Bt, S, Dp), lambda b: (b, 0, 0)),
        ),
        compiler_params=pltpu.CompilerParams(
            dimension_semantics=("parallel",),           # batch blocks shard across TCs on v7x
            vmem_limit_bytes=vmem_limit),
    )(emb_albert, wproj_t, w_red, wh1, bh1, wh2, bh2)

    # slice the lane-dense padded output back to the module's H+1 width
    return out_padded[..., :Dc]


# ----------------------------------------------------------------------------
# Pure-JAX reference (for correctness check only)
# ----------------------------------------------------------------------------
def embedding_ref(emb_albert, params):
    f32 = jnp.float32
    emb = emb_albert.astype(f32)
    w_proj = params["w_proj"].astype(emb_albert.dtype).astype(f32)      # same rounding as kernel
    x = jnp.einsum("bsd,hd->bsh", emb, w_proj)                          # proj (no bias)
    score = jnp.einsum("bsh,hk->bsk", x, params["w_att"])[..., 0]       # (B, S)
    attn = jax.nn.softmax(score, axis=1)                                # over S
    avg = jnp.sum(x * attn[:, :, None], axis=2, keepdims=True)          # (B, S, 1)
    h = jnp.concatenate([x, avg], axis=2)                               # (B, S, H+1)
    layers = [
        (params["hwy_wt1"], params["hwy_bt1"], params["hwy_wg1"], params["hwy_bg1"]),
        (params["hwy_wt2"], params["hwy_bt2"], params["hwy_wg2"], params["hwy_bg2"]),
    ]
    for wt, bt_, wg, bg in layers:
        g = jax.nn.sigmoid(jnp.einsum("bsc,dc->bsd", h, wg) + bg)
        t = jax.nn.relu(jnp.einsum("bsc,dc->bsd", h, wt) + bt_)
        h = g * t + (1.0 - g) * h
    return h


# ----------------------------------------------------------------------------
# Deterministic parameter init (shapes as implied by Embedding.forward)
# ----------------------------------------------------------------------------
def init_params(key, hidden_size, albert_size):
    H, D, Dc = hidden_size, albert_size, hidden_size + 1
    ks = jax.random.split(key, 10)
    u = lambda k, shape, bound: jax.random.uniform(k, shape, jnp.float32, -bound, bound)
    bp = 1.0 / math.sqrt(D)
    bh = 1.0 / math.sqrt(Dc)
    xav = math.sqrt(2.0 / (H + 1))                     # xavier_normal std for (H, 1)
    return {
        "w_proj": u(ks[0], (H, D), bp),                                # Linear(D, H, bias=False).weight
        "w_att": xav * jax.random.normal(ks[1], (H, 1), jnp.float32),  # AverageAttn.avgatt
        "hwy_wt1": u(ks[2], (Dc, Dc), bh), "hwy_bt1": u(ks[3], (Dc,), bh),
        "hwy_wg1": u(ks[4], (Dc, Dc), bh), "hwy_bg1": u(ks[5], (Dc,), bh),
        "hwy_wt2": u(ks[6], (Dc, Dc), bh), "hwy_bt2": u(ks[7], (Dc,), bh),
        "hwy_wg2": u(ks[8], (Dc, Dc), bh), "hwy_bg2": u(ks[9], (Dc,), bh),
    }


if __name__ == "__main__":
    B, S = 2, 8
    hidden_size = 64
    albert_size = 128        # small stand-in for the ALBERT hidden width (768 for albert-base-v2)

    key = jax.random.PRNGKey(0)
    k_emb, k_par = jax.random.split(key, 2)

    # ALBERT output hidden states (the untranslated part of the forward), streamed in bf16.
    emb_albert = jax.random.normal(k_emb, (B, S, albert_size), jnp.bfloat16)
    params = init_params(k_par, hidden_size, albert_size)

    out = embedding_pallas(emb_albert, params)
    jax.block_until_ready(out)
    assert out.shape == (B, S, hidden_size + 1)

    ref = embedding_ref(emb_albert, params)
    np.testing.assert_allclose(np.asarray(out, dtype=np.float32), np.asarray(ref),
                               rtol=2e-2, atol=2e-2)

    print("KERNEL_OK")
</pallas_src>

<mosaic_0001>
module attributes {stable_mosaic.version = 11 : i64} {
  func.func @_embedding_kernel(%arg0: i32, %arg1: memref<1x8x128xbf16, #tpu.memory_space<vmem>>, %arg2: memref<128x128xbf16, #tpu.memory_space<vmem>>, %arg3: memref<128x2xf32, #tpu.memory_space<vmem>>, %arg4: memref<2x128x128xf32, #tpu.memory_space<vmem>>, %arg5: memref<2x1x128xf32, #tpu.memory_space<vmem>>, %arg6: memref<2x128x128xf32, #tpu.memory_space<vmem>>, %arg7: memref<2x1x128xf32, #tpu.memory_space<vmem>>, %arg8: memref<1x8x128xf32, #tpu.memory_space<vmem>>) attributes {dimension_semantics = [#tpu.dimension_semantics<parallel>], iteration_bounds = array<i64: 2>, scalar_prefetch = 0 : i64, scratch_operands = 0 : i64, tpu.core_type = #tpu.core_type<tc>, window_params = [{transform_indices = @transform_0, window_bounds = array<i64: 1, 8, 128>}, {pipeline_mode = #tpu.pipeline_mode<synchronous>, transform_indices = @transform_1, window_bounds = array<i64: 128, 128>}, {pipeline_mode = #tpu.pipeline_mode<synchronous>, transform_indices = @transform_2, window_bounds = array<i64: 128, 2>}, {pipeline_mode = #tpu.pipeline_mode<synchronous>, transform_indices = @transform_3, window_bounds = array<i64: 2, 128, 128>}, {pipeline_mode = #tpu.pipeline_mode<synchronous>, transform_indices = @transform_4, window_bounds = array<i64: 2, 1, 128>}, {pipeline_mode = #tpu.pipeline_mode<synchronous>, transform_indices = @transform_5, window_bounds = array<i64: 2, 128, 128>}, {pipeline_mode = #tpu.pipeline_mode<synchronous>, transform_indices = @transform_6, window_bounds = array<i64: 2, 1, 128>}, {transform_indices = @transform_7, window_bounds = array<i64: 1, 8, 128>}]} {
    %c0 = arith.constant 0 : index
    %c0_0 = arith.constant 0 : index
    %c0_1 = arith.constant 0 : index
    %0 = vector.load %arg1[%c0, %c0_0, %c0_1] : memref<1x8x128xbf16, #tpu.memory_space<vmem>>, vector<1x8x128xbf16>
    %1 = vector.shape_cast %0 : vector<1x8x128xbf16> to vector<8x128xbf16>
    %c0_2 = arith.constant 0 : index
    %c0_3 = arith.constant 0 : index
    %2 = vector.load %arg2[%c0_2, %c0_3] : memref<128x128xbf16, #tpu.memory_space<vmem>>, vector<128x128xbf16>
    %cst = arith.constant dense<0.000000e+00> : vector<8x128xf32>
    %3 = tpu.matmul %1, %2, %cst {dimension_numbers = #tpu.dot_dimension_numbers<[1], [0], [0], [1], [0, 0, 1, 1], [], []>} : vector<8x128xbf16>, vector<128x128xbf16>, vector<8x128xf32> -> vector<8x128xf32>
    %c0_4 = arith.constant 0 : index
    %c0_5 = arith.constant 0 : index
    %4 = vector.load %arg3[%c0_4, %c0_5] : memref<128x2xf32, #tpu.memory_space<vmem>>, vector<128x2xf32>
    %cst_6 = arith.constant dense<0.000000e+00> : vector<8x2xf32>
    %5 = tpu.matmul %3, %4, %cst_6 {dimension_numbers = #tpu.dot_dimension_numbers<[1], [0], [0], [1], [0, 0, 1, 1], [], []>} : vector<8x128xf32>, vector<128x2xf32>, vector<8x2xf32> -> vector<8x2xf32>
    %6 = vector.shape_cast %5 : vector<8x2xf32> to vector<1x8x2xf32>
    %7 = vector.extract_strided_slice %6 {offsets = [0, 0, 0], sizes = [1, 8, 1], strides = [1, 1, 1]} : vector<1x8x2xf32> to vector<1x8x1xf32>
    %8 = vector.extract_strided_slice %6 {offsets = [0, 0, 1], sizes = [1, 8, 1], strides = [1, 1, 1]} : vector<1x8x2xf32> to vector<1x8x1xf32>
    %cst_7 = arith.constant dense<0xFF800000> : vector<1x1xf32>
    %9 = vector.multi_reduction <maximumf>, %7, %cst_7 [1] : vector<1x8x1xf32> to vector<1x1xf32>
    %10 = vector.shape_cast %9 : vector<1x1xf32> to vector<1x1x1xf32>
    %11 = vector.broadcast %10 : vector<1x1x1xf32> to vector<1x8x1xf32>
    %12 = arith.subf %7, %11 : vector<1x8x1xf32>
    %13 = math.exp %12 : vector<1x8x1xf32>
    %cst_8 = arith.constant dense<0.000000e+00> : vector<1x1xf32>
    %14 = vector.multi_reduction <add>, %13, %cst_8 [1] : vector<1x8x1xf32> to vector<1x1xf32>
    %15 = vector.shape_cast %14 : vector<1x1xf32> to vector<1x1x1xf32>
    %16 = tpu.reciprocal %15 {approx = true} : vector<1x1x1xf32> -> vector<1x1x1xf32>
    %17 = vector.broadcast %16 : vector<1x1x1xf32> to vector<1x8x1xf32>
    %18 = arith.mulf %13, %17 : vector<1x8x1xf32>
    %19 = arith.mulf %18, %8 : vector<1x8x1xf32>
    %20 = tpu.iota {dimensions = array<i32: 1>} : vector<1x128xi32>
    %c64_i32 = arith.constant 64 : i32
    %21 = vector.broadcast %c64_i32 : i32 to vector<1x128xi32>
    %22 = arith.cmpi eq, %20, %21 : vector<1x128xi32>
    %cst_9 = arith.constant 1.000000e+00 : f32
    %cst_10 = arith.constant 0.000000e+00 : f32
    %23 = vector.broadcast %cst_9 : f32 to vector<1x128xf32>
    %24 = vector.broadcast %cst_10 : f32 to vector<1x128xf32>
    %25 = arith.select %22, %23, %24 : vector<1x128xi1>, vector<1x128xf32>
    %26 = vector.shape_cast %25 : vector<1x128xf32> to vector<1x1x128xf32>
    %27 = vector.broadcast %19 : vector<1x8x1xf32> to vector<1x8x128xf32>
    %28 = vector.broadcast %26 : vector<1x1x128xf32> to vector<1x8x128xf32>
    %29 = arith.mulf %27, %28 : vector<1x8x128xf32>
    %30 = vector.shape_cast %29 : vector<1x8x128xf32> to vector<8x128xf32>
    %31 = arith.addf %3, %30 : vector<8x128xf32>
    %c0_11 = arith.constant 0 : index
    %c0_12 = arith.constant 0 : index
    %c0_13 = arith.constant 0 : index
    %32 = vector.load %arg4[%c0_11, %c0_12, %c0_13] : memref<2x128x128xf32, #tpu.memory_space<vmem>>, vector<1x128x128xf32>
    %33 = vector.shape_cast %32 : vector<1x128x128xf32> to vector<128x128xf32>
    %cst_14 = arith.constant dense<0.000000e+00> : vector<8x128xf32>
    %34 = tpu.matmul %31, %33, %cst_14 {dimension_numbers = #tpu.dot_dimension_numbers<[1], [0], [0], [1], [0, 0, 1, 1], [], []>} : vector<8x128xf32>, vector<128x128xf32>, vector<8x128xf32> -> vector<8x128xf32>
    %c0_15 = arith.constant 0 : index
    %c0_16 = arith.constant 0 : index
    %c0_17 = arith.constant 0 : index
    %35 = vector.load %arg5[%c0_15, %c0_16, %c0_17] : memref<2x1x128xf32, #tpu.memory_space<vmem>>, vector<1x1x128xf32>
    %36 = vector.shape_cast %35 : vector<1x1x128xf32> to vector<1x128xf32>
    %37 = vector.broadcast %36 : vector<1x128xf32> to vector<8x128xf32>
    %38 = arith.addf %34, %37 : vector<8x128xf32>
    %cst_18 = arith.constant 0.000000e+00 : f32
    %39 = vector.broadcast %cst_18 : f32 to vector<8x128xf32>
    %40 = arith.maximumf %38, %39 : vector<8x128xf32>
    %c1 = arith.constant 1 : index
    %c0_19 = arith.constant 0 : index
    %c0_20 = arith.constant 0 : index
    %41 = vector.load %arg4[%c1, %c0_19, %c0_20] : memref<2x128x128xf32, #tpu.memory_space<vmem>>, vector<1x128x128xf32>
    %42 = vector.shape_cast %41 : vector<1x128x128xf32> to vector<128x128xf32>
    %cst_21 = arith.constant dense<0.000000e+00> : vector<8x128xf32>
    %43 = tpu.matmul %31, %42, %cst_21 {dimension_numbers = #tpu.dot_dimension_numbers<[1], [0], [0], [1], [0, 0, 1, 1], [], []>} : vector<8x128xf32>, vector<128x128xf32>, vector<8x128xf32> -> vector<8x128xf32>
    %c1_22 = arith.constant 1 : index
    %c0_23 = arith.constant 0 : index
    %c0_24 = arith.constant 0 : index
    %44 = vector.load %arg5[%c1_22, %c0_23, %c0_24] : memref<2x1x128xf32, #tpu.memory_space<vmem>>, vector<1x1x128xf32>
    %45 = vector.shape_cast %44 : vector<1x1x128xf32> to vector<1x128xf32>
    %46 = vector.broadcast %45 : vector<1x128xf32> to vector<8x128xf32>
    %47 = arith.addf %43, %46 : vector<8x128xf32>
    %48 = arith.negf %47 : vector<8x128xf32>
    %49 = math.exp %48 : vector<8x128xf32>
    %cst_25 = arith.constant 1.000000e+00 : f32
    %50 = vector.broadcast %cst_25 : f32 to vector<8x128xf32>
    %51 = arith.addf %50, %49 : vector<8x128xf32>
    %52 = arith.divf %50, %51 : vector<8x128xf32>
    %53 = arith.mulf %52, %40 : vector<8x128xf32>
    %cst_26 = arith.constant 1.000000e+00 : f32
    %54 = vector.broadcast %cst_26 : f32 to vector<8x128xf32>
    %55 = arith.subf %54, %52 : vector<8x128xf32>
    %56 = arith.mulf %55, %31 : vector<8x128xf32>
    %57 = arith.addf %53, %56 : vector<8x128xf32>
    %c0_27 = arith.constant 0 : index
    %c0_28 = arith.constant 0 : index
    %c0_29 = arith.constant 0 : index
    %58 = vector.load %arg6[%c0_27, %c0_28, %c0_29] : memref<2x128x128xf32, #tpu.memory_space<vmem>>, vector<1x128x128xf32>
    %59 = vector.shape_cast %58 : vector<1x128x128xf32> to vector<128x128xf32>
    %cst_30 = arith.constant dense<0.000000e+00> : vector<8x128xf32>
    %60 = tpu.matmul %57, %59, %cst_30 {dimension_numbers = #tpu.dot_dimension_numbers<[1], [0], [0], [1], [0, 0, 1, 1], [], []>} : vector<8x128xf32>, vector<128x128xf32>, vector<8x128xf32> -> vector<8x128xf32>
    %c0_31 = arith.constant 0 : index
    %c0_32 = arith.constant 0 : index
    %c0_33 = arith.constant 0 : index
    %61 = vector.load %arg7[%c0_31, %c0_32, %c0_33] : memref<2x1x128xf32, #tpu.memory_space<vmem>>, vector<1x1x128xf32>
    %62 = vector.shape_cast %61 : vector<1x1x128xf32> to vector<1x128xf32>
    %63 = vector.broadcast %62 : vector<1x128xf32> to vector<8x128xf32>
    %64 = arith.addf %60, %63 : vector<8x128xf32>
    %cst_34 = arith.constant 0.000000e+00 : f32
    %65 = vector.broadcast %cst_34 : f32 to vector<8x128xf32>
    %66 = arith.maximumf %64, %65 : vector<8x128xf32>
    %c1_35 = arith.constant 1 : index
    %c0_36 = arith.constant 0 : index
    %c0_37 = arith.constant 0 : index
    %67 = vector.load %arg6[%c1_35, %c0_36, %c0_37] : memref<2x128x128xf32, #tpu.memory_space<vmem>>, vector<1x128x128xf32>
    %68 = vector.shape_cast %67 : vector<1x128x128xf32> to vector<128x128xf32>
    %cst_38 = arith.constant dense<0.000000e+00> : vector<8x128xf32>
    %69 = tpu.matmul %57, %68, %cst_38 {dimension_numbers = #tpu.dot_dimension_numbers<[1], [0], [0], [1], [0, 0, 1, 1], [], []>} : vector<8x128xf32>, vector<128x128xf32>, vector<8x128xf32> -> vector<8x128xf32>
    %c1_39 = arith.constant 1 : index
    %c0_40 = arith.constant 0 : index
    %c0_41 = arith.constant 0 : index
    %70 = vector.load %arg7[%c1_39, %c0_40, %c0_41] : memref<2x1x128xf32, #tpu.memory_space<vmem>>, vector<1x1x128xf32>
    %71 = vector.shape_cast %70 : vector<1x1x128xf32> to vector<1x128xf32>
    %72 = vector.broadcast %71 : vector<1x128xf32> to vector<8x128xf32>
    %73 = arith.addf %69, %72 : vector<8x128xf32>
    %74 = arith.negf %73 : vector<8x128xf32>
    %75 = math.exp %74 : vector<8x128xf32>
    %cst_42 = arith.constant 1.000000e+00 : f32
    %76 = vector.broadcast %cst_42 : f32 to vector<8x128xf32>
    %77 = arith.addf %76, %75 : vector<8x128xf32>
    %78 = arith.divf %76, %77 : vector<8x128xf32>
    %79 = arith.mulf %78, %66 : vector<8x128xf32>
    %cst_43 = arith.constant 1.000000e+00 : f32
    %80 = vector.broadcast %cst_43 : f32 to vector<8x128xf32>
    %81 = arith.subf %80, %78 : vector<8x128xf32>
    %82 = arith.mulf %81, %57 : vector<8x128xf32>
    %83 = arith.addf %79, %82 : vector<8x128xf32>
    %84 = vector.shape_cast %83 : vector<8x128xf32> to vector<1x8x128xf32>
    %c0_44 = arith.constant 0 : index
    %c0_45 = arith.constant 0 : index
    %c0_46 = arith.constant 0 : index
    %85 = vector.load %arg8[%c0_44, %c0_45, %c0_46] : memref<1x8x128xf32, #tpu.memory_space<vmem>>, vector<1x8x128xf32>
    tpu.vector_store %arg8[%c0_44, %c0_45, %c0_46], %84 {strides = array<i32>} : memref<1x8x128xf32, #tpu.memory_space<vmem>>, vector<1x8x128xf32>,
    return
  }
  func.func @transform_0(%arg0: i32) -> (i32, i32, i32) {
    %c0_i32 = arith.constant 0 : i32
    %c0_i32_0 = arith.constant 0 : i32
    %c0_i32_1 = arith.constant 0 : i32
    return %arg0, %c0_i32, %c0_i32_0 : i32, i32, i32
  }
  func.func @transform_1(%arg0: i32) -> (i32, i32) {
    %c0_i32 = arith.constant 0 : i32
    %c0_i32_0 = arith.constant 0 : i32
    %c0_i32_1 = arith.constant 0 : i32
    return %c0_i32, %c0_i32_0 : i32, i32
  }
  func.func @transform_2(%arg0: i32) -> (i32, i32) {
    %c0_i32 = arith.constant 0 : i32
    %c0_i32_0 = arith.constant 0 : i32
    %c0_i32_1 = arith.constant 0 : i32
    return %c0_i32, %c0_i32_0 : i32, i32
  }
  func.func @transform_3(%arg0: i32) -> (i32, i32, i32) {
    %c0_i32 = arith.constant 0 : i32
    %c0_i32_0 = arith.constant 0 : i32
    %c0_i32_1 = arith.constant 0 : i32
    %c0_i32_2 = arith.constant 0 : i32
    return %c0_i32, %c0_i32_0, %c0_i32_1 : i32, i32, i32
  }
  func.func @transform_4(%arg0: i32) -> (i32, i32, i32) {
    %c0_i32 = arith.constant 0 : i32
    %c0_i32_0 = arith.constant 0 : i32
    %c0_i32_1 = arith.constant 0 : i32
    %c0_i32_2 = arith.constant 0 : i32
    return %c0_i32, %c0_i32_0, %c0_i32_1 : i32, i32, i32
  }
  func.func @transform_5(%arg0: i32) -> (i32, i32, i32) {
    %c0_i32 = arith.constant 0 : i32
    %c0_i32_0 = arith.constant 0 : i32
    %c0_i32_1 = arith.constant 0 : i32
    %c0_i32_2 = arith.constant 0 : i32
    return %c0_i32, %c0_i32_0, %c0_i32_1 : i32, i32, i32
  }
  func.func @transform_6(%arg0: i32) -> (i32, i32, i32) {
    %c0_i32 = arith.constant 0 : i32
    %c0_i32_0 = arith.constant 0 : i32
    %c0_i32_1 = arith.constant 0 : i32
    %c0_i32_2 = arith.constant 0 : i32
    return %c0_i32, %c0_i32_0, %c0_i32_1 : i32, i32, i32
  }
  func.func @transform_7(%arg0: i32) -> (i32, i32, i32) {
    %c0_i32 = arith.constant 0 : i32
    %c0_i32_0 = arith.constant 0 : i32
    %c0_i32_1 = arith.constant 0 : i32
    return %arg0, %c0_i32, %c0_i32_0 : i32, i32, i32
  }
}

</mosaic_0001>

<bundles_post_ra>
// kernel: tpu_custom_call.1
= control target key start
LH: loop header
LB: loop body
LE: loop exit
PB: predicated region body
PF: predicated region fallthrough
CT: control target
= control target key end

     0   :  { %12 = vsyncpa [#allocation3], 0  ;;  %s2057_s0 = inlined_call_operand.vmem [shape: bf16[2,8,128], index: 0, kind: input, shape index: {}]   ;;  %s2058_s1 = inlined_call_operand.vmem [shape: bf16[128,128], index: 1, kind: input, shape index: {}]   ;;  %s2059_s2 = inlined_call_operand.vmem [shape: f32[128,2], index: 2, kind: input, shape index: {}]   ;;  %s2060_s3 = inlined_call_operand.hbm [shape: f32[2,128,128], index: 3, kind: input, shape index: {}]   ;;  %s2061_s4 = inlined_call_operand.vmem [shape: f32[2,1,128], index: 4, kind: input, shape index: {}]   ;;  %s2062_s5 = inlined_call_operand.hbm [shape: f32[2,128,128], index: 5, kind: input, shape index: {}]   ;;  %s2063_s6 = inlined_call_operand.vmem [shape: f32[2,1,128], index: 6, kind: input, shape index: {}]   ;;  %s2064_s7 = inlined_call_operand.hbm [shape: f32[2,8,128], index: 7, kind: output, shape index: {}]  }
   0x1   :  { %13 = vsyncpa [#allocation6], 0 }
   0x2   :  { %14 = vsyncpa [#allocation4], 0 }
   0x3   :  { %16 = vsyncpa [#allocation4 + $0x1], 0  ;;  %s1731_s24 = smov 0   ;;  %s1733_s25 = smov 0  }
   0x4   :  { %s1735_s26 = smov 0   ;;  %s1737_s27 = smov 0  }
   0x5 LB: > { %s1752_s28 = sadd.s32 4294967295, %s1679_s27   ;;  %s1026_s29 = sadd.s32 4294967294, %s1679_s27   ;;  %s1679_s27 = sphi %s1737_s27, %s2084_s27   ;;  %s1675_s26 = sphi %s1735_s26, %s2083_s26   ;;  %s1671_s25 = sphi %s1733_s25, %s2082_s25   ;;  %s1667_s24 = sphi %s1731_s24, %s2081_s24  }
   0x6   : > { %s1756_s30 = sadd.s32 1, %s1679_s27   ;;  %s181_s8 = sadd.s32 1, %s1675_s26 }
   0x7   : > { %s178_s9 = ssub.s32 %s1679_s27, %s1756_s30  ;;  %p191_p0 = scmp.ne.s32.totalorder %s1675_s26, %s1671_s25 }
   0x8   : > { %p179_p1 = scmp.eq.s32.totalorder %s178_s9, 0  ;;  %p192_p2 = scmp.eq.s32.totalorder %s1752_s28, 1 }
   0x9   : > { %p197_p3 = scmp.ne.s32.totalorder %s1671_s25, %s1667_s24  ;;  %p198_p4 = scmp.eq.s32.totalorder %s1026_s29, 1 }
   0xa   : > { %s1767_s10 = scalar_select %p179_p1, %s1675_s26, %s181_s8  }
   0xb   : > { %p1769_p5 = por %p192_p2, %p191_p0  ;;  %p1773_p6 = por %p198_p4, %p197_p3 }
   0xc   : > { %2068 = sst [smem:[#allocation11_spill]] %s1767_s10  ;;  %p1027_p7 = scmp.ge.s32.totalorder %s1679_s27, 1 }
   0xd   : > { %s2069_s11 = scalar_select %p1769_p5, 1, 0 }
   0xe   : > { %s2070_s12 = scalar_select %p1773_p6, 1, 0 }
   0xf   : > { %p205_p8 = scmp.lt.s32.totalorder %s1679_s27, 3  ;;  %p2065_p9 = scmp.eq.s32.totalorder %s1752_s28, 0 }
  0x10   : > { %s1681_s14 = smov [#allocation2]   ;;  %s1682_s17 = smov [#allocation5]  }
  0x11   : > { %p1780_p10 = pnand %p1027_p7, %p205_p8  ;;  %s223_s15 = sshll.u32 %s1681_s14, 4  ;;  %s224_s15 = int_to_ptr.vmem [resolvable:$true] %s223_s15 }
  0x12   : > { %s239_s18 = sshll.u32 %s1682_s17, 4  ;;  %s1553_s21 = scalar_lea.hbm %s2060_s3, 4096  ;;  %s1792_s18 = int_to_ptr.vmem [resolvable:$true] %s239_s18 }
  0x13   : > { %s2071_s13 = scalar_select %p1780_p10, 1, 0 }
  0x14   : > { %p1475_p11 = pneg %p1780_p10  ;;  %p1554_p13 = scmp.ne.s32.totalorder %s2060_s3, %s1553_s21 }
  0x15   : > { %p1560_p3 = scmp.lt.u32.totalorder %s1553_s21, %s2060_s3 }
  0x16   : > { %p1788_p12 = pnand %p2065_p9, %p1475_p11 }
  0x18   : > { %p1555_p0 = pneg %p1788_p12 }
  0x1a   : > { %p1556_p1 = pnand %p1555_p0, %p1554_p13 }
  0x1c   : > { %p1557_p2 = pneg %p1556_p1 }
  0x1e   : > { %p1562_p4 = pnand %p1560_p3, %p1557_p2 }
  0x20   : > { %1565 = shalt.err (!%p1562_p4)
}
  0x21   : > { %s1566_s9 = scalar_lea.vmem %s224_s15, 4096  ;;  %p1574_p9 = scmp.lt.s32.totalorder %s224_s15, %s224_s15 }
  0x22   : > { %p1567_p7 = scmp.ne.s32.totalorder %s224_s15, %s1566_s9  ;;  %p1575_p6 = scmp.lt.s32.totalorder %s1566_s9, %s1566_s9 }
  0x24   : > { %p1569_p8 = pnand %p1567_p7, %p1555_p0  ;;  %p1576_p5 = por %p1575_p6, %p1574_p9 }
  0x26   : > { %p1570_p11 = pneg %p1569_p8 }
  0x28   : > { %p1577_p10 = pnand %p1576_p5, %p1570_p11 }
  0x2a   : > { %1580 = shalt.err (!%p1577_p10)
}
  0x2b   : > { %s1683_s14 = smov 128   ;;  %s1684_s17 = smov 8  }
  0x2c   : > { %1478 = dma.hbm_to_vmem [thread:$0]  (!%p1788_p12), %s2060_s3, 4096, %s224_s15, [#allocation3], %s1683_s14, %s1683_s14, %s1684_s17  }
  0x2d   : > { %s1581_s23 = scalar_lea.hbm %s2062_s5, 4096 }
  0x2e   : > { %p1582_p13 = scmp.ne.s32.totalorder %s2062_s5, %s1581_s23  ;;  %p1588_p9 = scmp.lt.u32.totalorder %s1581_s23, %s2062_s5 }
  0x30   : > { %p1584_p5 = pnand %p1582_p13, %p1555_p0 }
  0x32   : > { %p1585_p6 = pneg %p1584_p5 }
  0x34   : > { %p1590_p10 = pnand %p1588_p9, %p1585_p6 }
  0x36   : > { %1593 = shalt.err (!%p1590_p10)
}
  0x37   : > { %s1594_s15 = scalar_lea.vmem %s1792_s18, 4096  ;;  %p1602_p4 = scmp.lt.s32.totalorder %s1792_s18, %s1792_s18 }
  0x38   : > { %p1595_p1 = scmp.ne.s32.totalorder %s1792_s18, %s1594_s15  ;;  %p1603_p7 = scmp.lt.s32.totalorder %s1594_s15, %s1594_s15 }
  0x3a   : > { %p1597_p2 = pnand %p1595_p1, %p1555_p0  ;;  %p1604_p8 = por %p1603_p7, %p1602_p4 }
  0x3c   : > { %p1598_p3 = pneg %p1597_p2 }
  0x3e   : > { %p1605_p11 = pnand %p1604_p8, %p1598_p3 }
  0x40   : > { %1608 = shalt.err (!%p1605_p11)
}
  0x41   : > { %1481 = dma.hbm_to_vmem [thread:$0]  (!%p1788_p12), %s2062_s5, 4096, %s1792_s18, [#allocation6], %s1683_s14, %s1683_s14, %s1684_s17  }
  0x42   : > { %p2073_p13 = scmp.ne.s32.totalorder %s2071_s13, 0 }
  0x43   : > { %p2074_p5 = scmp.eq.s32.totalorder (!%p2073_p13), %s1752_s28, 0 }
  0x44   : > { %265 = sbr.rel (%p2073_p13) target bundleno = 1293 (0x50d), region = 48 }
  0x4b   : > { %1654 = dma.done.wait (%p2074_p5), [#allocation3], 4096   ;;  %p2075_p0 = pmov %p2074_p5 }
  0x4d   : > { %1656 = vsyncadd (%p2075_p0), [#allocation3], 4294963200  ;;  %p2076_p6 = pmov %p2075_p0 }
  0x4e   : > { %p2077_p9 = pmov %p2075_p0 }
  0x4f   : > { %1658 = dma.done.wait (%p2076_p6), [#allocation6], 4096  }
  0x50   : > { %1660 = vsyncadd (%p2077_p9), [#allocation6], 4294963200  ;;  %v1685_v0 = vmov 0.0   ;;  %vm1686_vm0 = vmmov 0   ;;  %v1687_v1 = vmov 0.0|0.0   ;;  %v1533_v2 = vld [vmem:[%s2058_s1] sm:$0xff]  }
  0x51   : > { %1150 = vmatprep.subr.bf16.mxu0 %v1685_v0  ;;  %1166 = vmatprep.mubr.msk.bf16.mxu0 %vm1686_vm0, %v1685_v0  ;;  %v1534_v3 = vld [vmem:[%s2058_s1 + $0x8] sm:$0xff]   ;;  %v1535_v4 = vld [vmem:[%s2058_s1 + $0x10] sm:$0xff]   ;;  %v410_v5 = vld [vmem:[%s2059_s2] sm:$0xff]  ;;  %p300_p12 = scmp.lt.s32.totalorder %s1752_s28, 1  ;;  %v1688_v39 = vmov 0   ;;  %s1689_s23 = smov 127  }
  0x52   : > { %1345 = vmatprep.subr.bf16.mxu1 %v1687_v1  ;;  %1202 = vmatprep.mubr.msk.f32.mxu1 %vm1686_vm0, %v1685_v0  ;;  %v411_v6 = vld [vmem:[%s2059_s2 + $0x8] sm:$0xff]  ;;  %v412_v8 = vld [vmem:[%s2059_s2 + $0x10] sm:$0xff]  ;;  %v413_v9 = vld [vmem:[%s2059_s2 + $0x18] sm:$0xff]  ;;  %vm496_vm1 = vcmask 7168   ;;  %s297_s18 = sand.u32 1, %s1671_s25   ;;  %s1053_s17 = sshll.u32 %s1752_s28, 7 }
  0x53   : > { %1151 = vmatpush3.bf16.msra.mxu0 %v1533_v2  ;;  %v1346_v7 = vpack.c.bf16 %v411_v6, %v410_v5  ;;  %v1536_v10 = vld [vmem:[%s2058_s1 + $0x18] sm:$0xff]   ;;  %v1349_v11 = vpack.c.bf16 %v413_v9, %v412_v8  ;;  %v414_v12 = vld [vmem:[%s2059_s2 + $0x20] sm:$0xff]  ;;  %v415_v13 = vld [vmem:[%s2059_s2 + $0x28] sm:$0xff]  ;;  %s301_s10 = scalar_select %p300_p12, %s1752_s28, 1  ;;  %1532 = vset.pattern.permute.xlu0 %v1688_v39 }
  0x54   : > { %1152 = vmatprep.subr.bf16.mxu0 %v1685_v0  ;;  %v1537_v14 = vld [vmem:[%s2058_s1 + $0x20] sm:$0xff]   ;;  %v1352_v15 = vpack.c.bf16 %v415_v13, %v414_v12  ;;  %v416_v16 = vld [vmem:[%s2059_s2 + $0x30] sm:$0xff]  ;;  %v417_v17 = vld [vmem:[%s2059_s2 + $0x38] sm:$0xff]  ;;  %s1034_s14 = sshll.u32 %s297_s18, 3  ;;  %s2015_s29 = scalar_lea.hbm %s2064_s7, %s1053_s17 }
  0x55   : > { %1347 = vmatpush3.bf16.msra.mxu1 %v1346_v7  ;;  %v1538_v18 = vld [vmem:[%s2058_s1 + $0x28] sm:$0xff]   ;;  %v1355_v19 = vpack.c.bf16 %v417_v17, %v416_v16  ;;  %v418_v20 = vld [vmem:[%s2059_s2 + $0x40] sm:$0xff]  ;;  %v1539_v22 = vld [vmem:[%s2058_s1 + $0x30] sm:$0xff]   ;;  %s1035_s20 = sshll.u32 %s301_s10, 2  ;;  %s932_s8 = scalar_lea.sflag [#allocation4], %s297_s18 }
  0x56   : > { %1348 = vmatprep.subr.bf16.mxu1 %v1687_v1  ;;  %v419_v21 = vld [vmem:[%s2059_s2 + $0x48] sm:$0xff]  ;;  %v420_v24 = vld [vmem:[%s2059_s2 + $0x50] sm:$0xff]  ;;  %v421_v25 = vld [vmem:[%s2059_s2 + $0x58] sm:$0xff]  ;;  %s303_s10 = scalar_lea.vmem %s2057_s0, %s1035_s20  ;;  %s299_s20 = scalar_lea.vmem [#allocation7], %s1034_s14 }
  0x57   : > { %1153 = vmatpush3.bf16.msra.mxu0 %v1534_v3  ;;  %v1358_v23 = vpack.c.bf16 %v419_v21, %v418_v20  ;;  %v1540_v26 = vld [vmem:[%s2058_s1 + $0x38] sm:$0xff]   ;;  %v1361_v27 = vpack.c.bf16 %v421_v25, %v420_v24  ;;  %v422_v28 = vld [vmem:[%s2059_s2 + $0x60] sm:$0xff]  ;;  %v423_v29 = vld [vmem:[%s2059_s2 + $0x68] sm:$0xff]  ;;  %s945_s21 = sshll.u32 %s299_s20, 4  ;;  %p2078_p1 = scmp.ne.s32.totalorder %s2069_s11, 0  ;;  %s2017_s21 = int_to_ptr.vmem [resolvable:$true] %s945_s21 }
  0x58   : > { %1154 = vmatprep.subr.bf16.mxu0 %v1685_v0  ;;  %v305_v30 = vld [vmem:[%s303_s10] sm:$0xf]  ;;  %v1364_v31 = vpack.c.bf16 %v423_v29, %v422_v28  ;;  %v424_v32 = vld [vmem:[%s2059_s2 + $0x70] sm:$0xff]  ;;  %v425_v33 = vld [vmem:[%s2059_s2 + $0x78] sm:$0xff]  ;;  %s1609_s9 = scalar_lea.vmem %s2017_s21, 128  ;;  %s1690_s28 = smov [#allocation7]  }
  0x59   : > { %1350 = vmatpush3.bf16.msra.mxu1 %v1349_v11  ;;  %v1367_v34 = vpack.c.bf16 %v425_v33, %v424_v32  ;;  %v532_v40 = vld [vmem:[#allocation2] sm:$0xff]  ;;  %v533_v41 = vld [vmem:[#allocation2 + $0x8] sm:$0xff]  ;;  %v534_v45 = vld [vmem:[#allocation2 + $0x10] sm:$0xff]  ;;  %p1610_p10 = scmp.ne.s32.totalorder %s2017_s21, %s1609_s9  ;;  %s1613_s15 = sshll.u32 %s1690_s28, 4  ;;  %s1614_s15 = int_to_ptr.vmem [resolvable:$false] %s1613_s15 }
  0x5a   : > { %1351 = vmatprep.subr.bf16.mxu1 %v1687_v1  ;;  %v627_v42 = vld [vmem:[#allocation2 + $0x80] sm:$0xff]  ;;  %v1370_v43 = vpack.c.bf16 %v533_v41, %v532_v40  ;;  %v628_v44 = vld [vmem:[#allocation2 + $0x88] sm:$0xff]  ;;  %v535_v46 = vld [vmem:[#allocation2 + $0x18] sm:$0xff]  ;;  %s1615_s19 = scalar_lea.vmem %s1614_s15, 256  ;;  %p1616_p4 = scmp.lt.s32.totalorder %s2017_s21, %s1614_s15 }
  0x5b   : > { %1155 = vmatpush3.bf16.msra.mxu0 %v1535_v4  ;;  %v1394_v47 = vpack.c.bf16 %v628_v44, %v627_v42  ;;  %v629_v48 = vld [vmem:[#allocation2 + $0x90] sm:$0xff]  ;;  %v630_v49 = vld [vmem:[#allocation2 + $0x98] sm:$0xff]  ;;  %v1373_v50 = vpack.c.bf16 %v535_v46, %v534_v45  ;;  %v536_v52 = vld [vmem:[#allocation2 + $0x20] sm:$0xff]  ;;  %p1611_p2 = pnand %p1610_p10, %p2078_p1  ;;  %p1617_p7 = scmp.lt.s32.totalorder %s1615_s19, %s1609_s9 }
  0x5c   : > { %1156 = vmatprep.subr.bf16.mxu0 %v1685_v0  ;;  %v1397_v51 = vpack.c.bf16 %v630_v49, %v629_v48  ;;  %v537_v53 = vld [vmem:[#allocation2 + $0x28] sm:$0xff]  ;;  %v631_v54 = vld [vmem:[#allocation2 + $0xa0] sm:$0xff]  ;;  %v538_v58 = vld [vmem:[#allocation2 + $0x30] sm:$0xff] }
  0x5d   : > { %1353 = vmatpush3.bf16.msra.mxu1 %v1352_v15  ;;  %v632_v55 = vld [vmem:[#allocation2 + $0xa8] sm:$0xff]  ;;  %v1376_v56 = vpack.c.bf16 %v537_v53, %v536_v52  ;;  %v539_v59 = vld [vmem:[#allocation2 + $0x38] sm:$0xff]  ;;  %v633_v60 = vld [vmem:[#allocation2 + $0xb0] sm:$0xff]  ;;  %p1612_p3 = pneg %p1611_p2  ;;  %p1618_p8 = por %p1617_p7, %p1616_p4 }
  0x5e   : > { %1354 = vmatprep.subr.bf16.mxu1 %v1687_v1  ;;  %v1400_v57 = vpack.c.bf16 %v632_v55, %v631_v54  ;;  %v634_v61 = vld [vmem:[#allocation2 + $0xb8] sm:$0xff]  ;;  %v1379_v2 = vpack.c.bf16 %v539_v59, %v538_v58  ;;  %v540_v4 = vld [vmem:[#allocation2 + $0x40] sm:$0xff]  ;;  %v541_v5 = vld [vmem:[#allocation2 + $0x48] sm:$0xff] }
  0x5f   : > { %1157 = vmatpush3.bf16.msra.mxu0 %v1536_v10  ;;  %v1403_v3 = vpack.c.bf16 %v634_v61, %v633_v60  ;;  %v635_v6 = vld [vmem:[#allocation2 + $0xc0] sm:$0xff]  ;;  %v636_v7 = vld [vmem:[#allocation2 + $0xc8] sm:$0xff]  ;;  %v1382_v8 = vpack.c.bf16 %v541_v5, %v540_v4  ;;  %v542_v10 = vld [vmem:[#allocation2 + $0x50] sm:$0xff]  ;;  %p1619_p11 = pnand %p1618_p8, %p1612_p3 }
  0x60   : > { %1158 = vmatprep.subr.bf16.mxu0 %v1685_v0  ;;  %v1406_v9 = vpack.c.bf16 %v636_v7, %v635_v6  ;;  %v543_v11 = vld [vmem:[#allocation2 + $0x58] sm:$0xff]  ;;  %v637_v12 = vld [vmem:[#allocation2 + $0xd0] sm:$0xff]  ;;  %v544_v16 = vld [vmem:[#allocation2 + $0x60] sm:$0xff] }
  0x61   : > { %1356 = vmatpush3.bf16.msra.mxu1 %v1355_v19  ;;  %v638_v13 = vld [vmem:[#allocation2 + $0xd8] sm:$0xff]  ;;  %v545_v17 = vld [vmem:[#allocation2 + $0x68] sm:$0xff]  ;;  %v546_v44 = vld [vmem:[#allocation2 + $0x70] sm:$0xff] }
  0x62   : > { %1357 = vmatprep.subr.bf16.mxu1 %v1687_v1  ;;  %v1409_v15 = vpack.c.bf16 %v638_v13, %v637_v12  ;;  %v640_v19 = vld [vmem:[#allocation2 + $0xe8] sm:$0xff]  ;;  %v1388_v20 = vpack.c.bf16 %v545_v17, %v544_v16  ;;  %v547_v45 = vld [vmem:[#allocation2 + $0x78] sm:$0xff]  ;;  %v641_v46 = vld [vmem:[#allocation2 + $0xf0] sm:$0xff] }
  0x63   : > { %1159 = vmatpush3.bf16.msra.mxu0 %v1537_v14  ;;  %v1385_v14 = vpack.c.bf16 %v543_v11, %v542_v10  ;;  %v642_v48 = vld [vmem:[#allocation2 + $0xf8] sm:$0xff]  ;;  %v826_v58 = vld [vmem:[#allocation5 + $0x80] sm:$0xff]  ;;  %v827_v60 = vld [vmem:[#allocation5 + $0x88] sm:$0xff] }
  0x64   : > { %1160 = vmatprep.subr.bf16.mxu0 %v1685_v0  ;;  %v1415_v49 = vpack.c.bf16 %v642_v48, %v641_v46  ;;  %v1442_v61 = vpack.c.bf16 %v827_v60, %v826_v58  ;;  %v736_v5 = vld [vmem:[#allocation5 + $0x28] sm:$0xff]  ;;  %v830_v6 = vld [vmem:[#allocation5 + $0xa0] sm:$0xff]  ;;  %v737_v10 = vld [vmem:[#allocation5 + $0x30] sm:$0xff] }
  0x65   : > { %1359 = vmatpush3.bf16.msra.mxu1 %v1358_v23  ;;  %v738_v11 = vld [vmem:[#allocation5 + $0x38] sm:$0xff]  ;;  %v832_v12 = vld [vmem:[#allocation5 + $0xb0] sm:$0xff]  ;;  %v739_v16 = vld [vmem:[#allocation5 + $0x40] sm:$0xff] }
  0x66   : > { %1360 = vmatprep.subr.bf16.mxu1 %v1687_v1  ;;  %v1427_v13 = vpack.c.bf16 %v738_v11, %v737_v10  ;;  %v740_v17 = vld [vmem:[#allocation5 + $0x48] sm:$0xff]  ;;  %v1050_v58 = vld [vmem:[%s2063_s6 + $0x1] ss:$0 sm:$0xff] }
  0x67   : > { %1161 = vmatpush3.bf16.msra.mxu0 %v1538_v18  ;;  %v639_v18 = vld [vmem:[#allocation2 + $0xe0] sm:$0xff] }
  0x68   : > { %1162 = vmatprep.subr.bf16.mxu0 %v1685_v0  ;;  %v1412_v21 = vpack.c.bf16 %v640_v19, %v639_v18  ;;  %v834_v18 = vld [vmem:[#allocation5 + $0xc0] sm:$0xff]  ;;  %v1430_v19 = vpack.c.bf16 %v740_v17, %v739_v16 }
  0x69   : > { %1362 = vmatpush3.bf16.msra.mxu1 %v1361_v27 }
  0x6a   : > { %1363 = vmatprep.subr.bf16.mxu1 %v1687_v1 }
  0x6b   : > { %1163 = vmatpush3.bf16.msra.mxu0 %v1539_v22 }
  0x6c   : > { %1164 = vmatprep.subr.bf16.mxu0 %v1685_v0 }
  0x6d   : > { %1365 = vmatpush3.bf16.msra.mxu1 %v1364_v31 }
  0x6e   : > { %1366 = vmatprep.subr.bf16.mxu1 %v1687_v1 }
  0x6f   : > { %1165 = vmatpush3.bf16.msra.mxu0 %v1540_v26 }
  0x70   : > { %1369 = vmatprep.subr.bf16.mxu0 %v1687_v1 }
  0x71   : > { %1368 = vmatpush3.bf16.msra.mxu1 %v1367_v34 }
  0x72   : > { %1167 = vmatmul.mubr.bf16.vlgmr.msra.gmra.mrb[0].mxu0 %v305_v30  ;;  %1393 = vmatprep.subr.bf16.mxu1 %v1687_v1 }
  0x73   : > { %1237 = vmatprep.mubr.msk.f32.mxu0 %vm1686_vm0, %v1685_v0  ;;  %1371 = vmatpush3.bf16.msra.mxu0 %v1370_v43 }
  0x74   : > { %1372 = vmatprep.subr.bf16.mxu0 %v1687_v1 }
  0x77   : > { %1374 = vmatpush3.bf16.msra.mxu0 %v1373_v50  ;;  %v521_v50 = vlaneseq }
  0x78   : > { %1375 = vmatprep.subr.bf16.mxu0 %v1687_v1 }
  0x7b   : > { %1377 = vmatpush3.bf16.msra.mxu0 %v1376_v56  ;;  %v731_v56 = vld [vmem:[#allocation5] sm:$0xff] }
  0x7c   : > { %1378 = vmatprep.subr.bf16.mxu0 %v1687_v1 }
  0x7f   : > { %1380 = vmatpush3.bf16.msra.mxu0 %v1379_v2 }
  0x80   : > { %1381 = vmatprep.subr.bf16.mxu0 %v1687_v1 }
  0x83   : > { %1383 = vmatpush3.bf16.msra.mxu0 %v1382_v8  ;;  %v831_v8 = vld [vmem:[#allocation5 + $0xa8] sm:$0xff] }
  0x84   : > { %1384 = vmatprep.subr.bf16.mxu0 %v1687_v1 }
  0x87   : > { %1386 = vmatpush3.bf16.msra.mxu0 %v1385_v14  ;;  %v833_v14 = vld [vmem:[#allocation5 + $0xb8] sm:$0xff] }
  0x88   : > { %1387 = vmatprep.subr.bf16.mxu0 %v1687_v1 }
  0x8b   : > { %1389 = vmatpush3.bf16.msra.mxu0 %v1388_v20  ;;  %v835_v20 = vld [vmem:[#allocation5 + $0xc8] sm:$0xff] }
  0x8c   : > { %1390 = vmatprep.subr.bf16.mxu0 %v1687_v1 }
 0x145   : > { %v1952_v35 = vpop.f32.mrb[0].mxu0 }
 0x146   : > { %v1168_v36 = vpop.f32.mrb[1].mxu0  ;;  %1203 = vmatmul.mubr.f32.vlgmr.msra.gmra.mrb[0].mxu1 %v1952_v35 }
 0x147   : > { %v407_v37 = vpop.f32.mrb[2].mxu0  ;;  %1272 = vmatprep.mubr.msk.f32.mxu1 %vm1686_vm0, %v1685_v0  ;;  %1395 = vmatpush3.bf16.msra.mxu1 %v1394_v47  ;;  %v1391_v47 = vpack.c.bf16 %v547_v45, %v546_v44 }
 0x148   : > { %v1169_v38 = vpop.f32.mrb[3].mxu0  ;;  %1396 = vmatprep.subr.bf16.mxu1 %v1687_v1 }
 0x149   : > { %1392 = vmatpush3.bf16.msra.mxu0 %v1391_v47 }
 0x14a   : > { %1417 = vmatprep.subr.bf16.mxu0 %v1687_v1 }
 0x14b   : > { %1398 = vmatpush3.bf16.msra.mxu1 %v1397_v51  ;;  %v522_v51 = vand.u32 127, %v521_v50 }
 0x14c   : > { %1399 = vmatprep.subr.bf16.mxu1 %v1687_v1 }
 0x14d   : > { %vm523_vm2 = vcmp.eq.s32.totalorder %v522_v51, 64 }
 0x14e   : > { %v524_v52 = vsel %vm523_vm2, 1.0, %v1685_v0 }
 0x14f   : > { %1401 = vmatpush3.bf16.msra.mxu1 %v1400_v57  ;;  %v732_v57 = vld [vmem:[#allocation5 + $0x8] sm:$0xff] }
 0x150   : > { %1402 = vmatprep.subr.bf16.mxu1 %v1687_v1  ;;  %v1418_v59 = vpack.c.bf16 %v732_v57, %v731_v56 }
 0x153   : > { %1404 = vmatpush3.bf16.msra.mxu1 %v1403_v3  ;;  %v829_v3 = vld [vmem:[#allocation5 + $0x98] sm:$0xff] }
 0x154   : > { %1405 = vmatprep.subr.bf16.mxu1 %v1687_v1 }
 0x157   : > { %1407 = vmatpush3.bf16.msra.mxu1 %v1406_v9  ;;  %v1448_v9 = vpack.c.bf16 %v831_v8, %v830_v6 }
 0x158   : > { %1408 = vmatprep.subr.bf16.mxu1 %v1687_v1 }
 0x15b   : > { %1410 = vmatpush3.bf16.msra.mxu1 %v1409_v15  ;;  %v1451_v15 = vpack.c.bf16 %v833_v14, %v832_v12 }
 0x15c   : > { %1411 = vmatprep.subr.bf16.mxu1 %v1687_v1 }
 0x15f   : > { %1413 = vmatpush3.bf16.msra.mxu1 %v1412_v21  ;;  %v741_v21 = vld [vmem:[#allocation5 + $0x50] sm:$0xff] }
 0x160   : > { %1414 = vmatprep.subr.bf16.mxu1 %v1687_v1 }
 0x163   : > { %1416 = vmatpush3.bf16.msra.mxu1 %v1415_v49 }
 0x164   : > { %1441 = vmatprep.subr.bf16.mxu1 %v1687_v1 }
 0x219   : > { %v492_v62 = vpop.f32.mrb[0].mxu1 }
 0x21a   : > { %517 = vrot.lane.b32.xlu0 %v492_v62, %s1689_s23  ;;  %v1204_v63 = vpop.f32.mrb[1].mxu1  ;;  %v497_v22 = vsel %vm496_vm1, %v492_v62, -inf }
 0x21b   : > { %v498_v23 = vrot.slane %v497_v22, 4  ;;  %v828_v63 = vld [vmem:[#allocation5 + $0x90] sm:$0xff] }
 0x21c   : > { %v1445_v4 = vpack.c.bf16 %v829_v3, %v828_v63 }
 0x21d   : > { %v499_v24 = vmax.f32 %v497_v22, %v498_v23  ;;  %v742_v22 = vld [vmem:[#allocation5 + $0x58] sm:$0xff]  ;;  %v1454_v23 = vpack.c.bf16 %v835_v20, %v834_v18 }
 0x21f   : > { %v500_v25 = vrot.slane %v499_v24, 2 }
 0x221   : > { %v501_v26 = vmax.f32 %v499_v24, %v500_v25  ;;  %v836_v24 = vld [vmem:[#allocation5 + $0xd0] sm:$0xff]  ;;  %v837_v25 = vld [vmem:[#allocation5 + $0xd8] sm:$0xff] }
 0x223   : > { %v502_v27 = vrot.slane %v501_v26, 1 }
 0x225   : > { %v503_v28 = vmax.f32 %v501_v26, %v502_v27  ;;  %v1433_v26 = vpack.c.bf16 %v742_v22, %v741_v21  ;;  %v1457_v27 = vpack.c.bf16 %v837_v25, %v836_v24 }
 0x227   : > { %v504_v29 = vsub.f32 %v492_v62, %v503_v28  ;;  %v734_v62 = vld [vmem:[#allocation5 + $0x18] sm:$0xff]  ;;  %v743_v28 = vld [vmem:[#allocation5 + $0x60] sm:$0xff] }
 0x229   : > { %v505_v30 = vmul.f32 1.442695, %v504_v29  ;;  %v744_v29 = vld [vmem:[#allocation5 + $0x68] sm:$0xff] }
 0x22b   : > { %1541 = vpow2.f32 %v505_v30  ;;  %v838_v30 = vld [vmem:[#allocation5 + $0xe0] sm:$0xff] }
 0x235   : > { %v1542_v31 = vpop.eup %1541 }
 0x236   : > { %v507_v32 = vsel %vm496_vm1, %v1542_v31, 0.0 }
 0x237   : > { %v508_v33 = vrot.slane %v507_v32, 4 }
 0x239   : > { %v509_v34 = vadd.f32 %v508_v33, %v507_v32  ;;  %v1436_v32 = vpack.c.bf16 %v744_v29, %v743_v28 }
 0x23b   : > { %v510_v36 = vrot.slane %v509_v34, 2 }
 0x23d   : > { %v511_v37 = vadd.f32 %v510_v36, %v509_v34  ;;  %v745_v34 = vld [vmem:[#allocation5 + $0x70] sm:$0xff]  ;;  %v746_v36 = vld [vmem:[#allocation5 + $0x78] sm:$0xff] }
 0x23f   : > { %v512_v38 = vrot.slane %v511_v37, 1 }
 0x241   : > { %v513_v39 = vadd.f32 %v512_v38, %v511_v37  ;;  %v840_v37 = vld [vmem:[#allocation5 + $0xf0] sm:$0xff]  ;;  %v841_v38 = vld [vmem:[#allocation5 + $0xf8] sm:$0xff] }
 0x243   : > { %1543 = vrcp.f32 %v513_v39  ;;  %v1439_v39 = vpack.c.bf16 %v746_v36, %v745_v34 }
 0x24d   : > { %v1544_v40 = vpop.eup %1543 }
 0x24e   : > { %v515_v41 = vmul.f32 %v1544_v40, %v1542_v31  ;;  %v839_v31 = vld [vmem:[#allocation5 + $0xe8] sm:$0xff]  ;;  %v1463_v40 = vpack.c.bf16 %v841_v38, %v840_v37 }
 0x24f   : > { %v1460_v33 = vpack.c.bf16 %v839_v31, %v838_v30 }
 0x28c   : > { %v518_v42 = vpop.permute.xlu0 %517 }
 0x28d   : > { %v520_v43 = vmul.f32 %v518_v42, %v515_v41  ;;  %v1046_v41 = vld [vmem:[%s2061_s4 + $0x1] ss:$0 sm:$0xff] }
 0x28f   : > { %527 = vperm.xlu0 %1532, %v520_v43  }
 0x30e   : > { %v528_v53 = vpop.permute.xlu0 %527 }
 0x30f   : > { %v530_v54 = vmul.f32 %v528_v53, %v524_v52 }
 0x311   : > { %v1975_v55 = vadd.f32 %v530_v54, %v1952_v35  ;;  %v733_v35 = vld [vmem:[#allocation5 + $0x10] sm:$0xff] }
 0x312   : > { %v1421_v2 = vpack.c.bf16 %v734_v62, %v733_v35 }
 0x313   : > { %1238 = vmatmul.mubr.f32.vlgmr.msra.gmra.mrb[4].mxu0 %v1975_v55  ;;  %1273 = vmatmul.mubr.f32.vlgmr.msra.gmra.mrb[2].mxu1 %v1975_v55 }
 0x314   : > { %1307 = vmatprep.mubr.msk.f32.mxu0 %vm1686_vm0, %v1685_v0  ;;  %1342 = vmatprep.mubr.msk.f32.mxu1 %vm1686_vm0, %v1685_v0  ;;  %v735_v0 = vld [vmem:[#allocation5 + $0x20] sm:$0xff] }
 0x315   : > { %1419 = vmatpush3.bf16.msra.mxu0 %v1418_v59  ;;  %1443 = vmatpush3.bf16.msra.mxu1 %v1442_v61  ;;  %v1424_v7 = vpack.c.bf16 %v736_v5, %v735_v0 }
 0x316   : > { %1420 = vmatprep.subr.bf16.mxu0 %v1687_v1  ;;  %1444 = vmatprep.subr.bf16.mxu1 %v1687_v1 }
 0x319   : > { %1422 = vmatpush3.bf16.msra.mxu0 %v1421_v2  ;;  %1446 = vmatpush3.bf16.msra.mxu1 %v1445_v4 }
 0x31a   : > { %1423 = vmatprep.subr.bf16.mxu0 %v1687_v1  ;;  %1447 = vmatprep.subr.bf16.mxu1 %v1687_v1 }
 0x31d   : > { %1425 = vmatpush3.bf16.msra.mxu0 %v1424_v7  ;;  %1449 = vmatpush3.bf16.msra.mxu1 %v1448_v9 }
 0x31e   : > { %1426 = vmatprep.subr.bf16.mxu0 %v1687_v1  ;;  %1450 = vmatprep.subr.bf16.mxu1 %v1687_v1 }
 0x321   : > { %1428 = vmatpush3.bf16.msra.mxu0 %v1427_v13  ;;  %1452 = vmatpush3.bf16.msra.mxu1 %v1451_v15 }
 0x322   : > { %1429 = vmatprep.subr.bf16.mxu0 %v1687_v1  ;;  %1453 = vmatprep.subr.bf16.mxu1 %v1687_v1 }
 0x325   : > { %1431 = vmatpush3.bf16.msra.mxu0 %v1430_v19  ;;  %1455 = vmatpush3.bf16.msra.mxu1 %v1454_v23 }
 0x326   : > { %1432 = vmatprep.subr.bf16.mxu0 %v1687_v1  ;;  %1456 = vmatprep.subr.bf16.mxu1 %v1687_v1 }
 0x329   : > { %1434 = vmatpush3.bf16.msra.mxu0 %v1433_v26  ;;  %1458 = vmatpush3.bf16.msra.mxu1 %v1457_v27 }
 0x32a   : > { %1435 = vmatprep.subr.bf16.mxu0 %v1687_v1  ;;  %1459 = vmatprep.subr.bf16.mxu1 %v1687_v1 }
 0x32d   : > { %1437 = vmatpush3.bf16.msra.mxu0 %v1436_v32  ;;  %1461 = vmatpush3.bf16.msra.mxu1 %v1460_v33 }
 0x32e   : > { %1438 = vmatprep.subr.bf16.mxu0 %v1687_v1  ;;  %1462 = vmatprep.subr.bf16.mxu1 %v1687_v1  ;;  %v1044_v1 = vld [vmem:[%s2061_s4] ss:$0 sm:$0xff] }
 0x331   : > { %1440 = vmatpush3.bf16.msra.mxu0 %v1439_v39  ;;  %1464 = vmatpush3.bf16.msra.mxu1 %v1463_v40 }
 0x3e6   : > { %v621_v42 = vpop.f32.mrb[4].mxu0  ;;  %v717_v43 = vpop.f32.mrb[2].mxu1 }
 0x3e7   : > { %v718_v44 = vadd.f32 %v1046_v41, %v717_v43  ;;  %v1239_v45 = vpop.f32.mrb[5].mxu0  ;;  %v1274_v46 = vpop.f32.mrb[3].mxu1  ;;  %v622_v50 = vadd.f32 %v1044_v1, %v621_v42 }
 0x3e9   : > { %v1047_v47 = vmul.f32 -1.442695, %v718_v44  ;;  %v625_v51 = vmax.f32 %v622_v50, 0.0 }
 0x3eb   : > { %1545 = vpow2.f32 %v1047_v47 }
 0x3f5   : > { %v1546_v48 = vpop.eup %1545 }
 0x3f6   : > { %v724_v49 = vadd.f32 1.0, %v1546_v48 }
 0x3f8   : > { %1547 = vrcp.f32 %v724_v49 }
 0x402   : > { %v1548_v52 = vpop.eup %1547 }
 0x403   : > { %v727_v53 = vmul.f32 %v1548_v52, %v625_v51  ;;  %v728_v54 = vsub.f32 1.0, %v1548_v52 }
 0x405   : > { %v729_v56 = vmul.f32 %v728_v54, %v1975_v55  ;;  %v1048_v55 = vld [vmem:[%s2063_s6] ss:$0 sm:$0xff] }
 0x407   : > { %v730_v57 = vadd.f32 %v729_v56, %v727_v53 }
 0x409   : > { %1308 = vmatmul.mubr.f32.vlgmr.msra.gmra.mrb[6].mxu0 %v730_v57  ;;  %1343 = vmatmul.mubr.f32.vlgmr.msra.gmra.mrb[4].mxu1 %v730_v57 }
 0x4dc   : > { %v820_v59 = vpop.f32.mrb[6].mxu0  ;;  %v916_v60 = vpop.f32.mrb[4].mxu1 }
 0x4dd   : > { %v917_v61 = vadd.f32 %v1050_v58, %v916_v60  ;;  %v1309_v35 = vpop.f32.mrb[7].mxu0  ;;  %v1344_v62 = vpop.f32.mrb[5].mxu1  ;;  %v821_v4 = vadd.f32 %v1048_v55, %v820_v59 }
 0x4df   : > { %v1051_v63 = vmul.f32 -1.442695, %v917_v61  ;;  %v824_v0 = vmax.f32 %v821_v4, 0.0 }
 0x4e1   : > { %1549 = vpow2.f32 %v1051_v63 }
 0x4eb   : > { %v1550_v2 = vpop.eup %1549 }
 0x4ec   : > { %v923_v3 = vadd.f32 1.0, %v1550_v2 }
 0x4ee   : > { %1551 = vrcp.f32 %v923_v3 }
 0x4f8   : > { %v1552_v5 = vpop.eup %1551 }
 0x4f9   : > { %v926_v6 = vmul.f32 %v1552_v5, %v824_v0  ;;  %v927_v7 = vsub.f32 1.0, %v1552_v5 }
 0x4fb   : > { %v928_v8 = vmul.f32 %v927_v7, %v730_v57 }
 0x4fd   : > { %v929_v9 = vadd.f32 %v928_v8, %v926_v6 }
 0x4ff   : > { %930 = vst [vmem:[%s299_s20] sm:$0xff] %v929_v9 }
 0x500   : > { %1622 = shalt.err (!%p1619_p11)
}
 0x501   : > { %s1623_s10 = scalar_lea.hbm %s2015_s29, 128  ;;  %s1627_s18 = scalar_lea.hbm %s2064_s7, 256 }
 0x502   : > { %p1624_p13 = scmp.ne.s32.totalorder %s2015_s29, %s1623_s10  ;;  %p1628_p6 = scmp.lt.u32.totalorder %s2015_s29, %s2064_s7 }
 0x503   : > { %p1629_p9 = scmp.lt.u32.totalorder %s1627_s18, %s1623_s10  ;;  %p1631_p10 = scmp.lt.u32.totalorder %s1623_s10, %s2015_s29 }
 0x504   : > { %p1625_p5 = pnand %p1624_p13, %p2078_p1 }
 0x505   : > { %p1630_p12 = por %p1629_p9, %p1628_p6 }
 0x506   : > { %p1626_p0 = pneg %p1625_p5 }
 0x507   : > { %p1632_p2 = por %p1631_p10, %p1630_p12 }
 0x509   : > { %p1633_p3 = pnand %p1632_p2, %p1626_p0 }
 0x50b   : > { %1636 = shalt.err (!%p1633_p3)
}
 0x50c   : > { %1473 = dma.vmem_to_hbm [thread:$0]  (%p2078_p1), %s2017_s21, 128, %s2015_s29, %s932_s8  }
 0x50d PF: > { %p1490_p4 = scmp.ge.s32.totalorder %s1679_s27, 2  ;;  %s957_s20 = sand.u32 1, %s1667_s24  }
 0x50e   : > { %p2079_p7 = scmp.ne.s32.totalorder %s2070_s12, 0  ;;  %s958_s22 = scalar_lea.sflag [#allocation4], %s957_s20 }
 0x510   : > { %p1483_p8 = pnand %p1490_p4, %p2079_p7 }
 0x512   : > { %1662 = dma.done.wait (!%p1483_p8), %s958_s22, 128  }
 0x513   : > { %1664 = vsyncadd (!%p1483_p8), %s958_s22, 4294967168  ;;  %s2080_s23 = sld [smem:[#allocation11_spill]]  ;;  %p19_p11 = scmp.ge.s32.totalorder %s1756_s30, 4  }
 0x514   : > { %s2081_s24 = smov %s1671_s25  ;;  %s2082_s25 = smov %s1675_s26 }
 0x515   : > { %s2084_s27 = smov %s1756_s30  ;;  %21 = sbr.rel (!%p19_p11) target bundleno = 5 (0x5), region = 96 }
 0x519   : > { %s2083_s26 = smov %s2080_s23 }
 0x51c   :  { %963 = vsyncpa [#allocation3], 1 }
 0x51d   :  { %965 = vsyncpa [#allocation3 + $0x1], 1 }
 0x51e   :  { %966 = vsyncpa [#allocation6], 1 }
 0x51f   :  { %967 = vsyncpa [#allocation4], 1 }
 0x520   :  { %969 = vsyncpa [#allocation4 + $0x1], 1 }

</bundles_post_ra>
